<compile_context>
chip_gen: v7x
topology: tpu7x:2x2x1
jax: 0.10.0
libtpu: 0.0.40
codegen_flags: <defaults>
</compile_context>

<pallas_src>
import functools

import jax
import jax.numpy as jnp
from jax import lax
from jax.experimental import pallas as pl
from jax.experimental.pallas import tpu as pltpu

INPUT_DIM = 32
HIDDEN_DIM = 128
OUTPUT_DIM = 16
BN_EPS = 1e-5


def _round_up(x, m):
    return (x + m - 1) // m * m


def _pick_vmem_limit():
    """Generation-aware VMEM budget: ~75% of physical, 32..96 MiB."""
    cap = None
    try:
        cap = getattr(pltpu.get_tpu_info(), "vmem_capacity_bytes", None)
    except Exception:
        cap = None
    if not cap:
        cap = 64 * 1024 * 1024          # conservative default: v7x physical
    return int(max(32 * 1024 * 1024, min(cap * 3 // 4, 96 * 1024 * 1024)))


def _fused_kernel(x_ref, w1_ref, gamma_ref, beta_ref, w2_ref, b2_ref, o_ref,
                  scale_ref, shift_ref, *, true_batch, lane_pack):
    """grid = (2, n_tiles); axis 0 is the pass (0 = stats, 1 = apply).

    scale_ref / shift_ref are persistent (1, HIDDEN) VMEM scratch.  During the
    stats pass they accumulate the per-feature sum and sum-of-squares of
    h = x @ W1 (b1 dropped: it cancels in training-mode BN); on the last stats
    step they are converted in place to the fused BN affine (scale, shift).
    The apply pass then computes relu(h*scale + shift) @ W2 + b2 per tile and
    stores it lane-densely.
    """
    p = pl.program_id(0)
    i = pl.program_id(1)
    n = pl.num_programs(1)

    @pl.when(p == 0)
    def _stats():
        @pl.when(i == 0)
        def _():
            scale_ref[...] = jnp.zeros_like(scale_ref)
            shift_ref[...] = jnp.zeros_like(shift_ref)

        # Padded batch rows of x are exactly zero -> their h rows are exactly
        # zero -> they contribute nothing to the sums; divide by true batch.
        h = jnp.dot(x_ref[...], w1_ref[...],
                    preferred_element_type=jnp.float32)
        scale_ref[...] += jnp.sum(h, axis=0, keepdims=True)       # running sum
        shift_ref[...] += jnp.sum(h * h, axis=0, keepdims=True)   # running sumsq

        @pl.when(i == n - 1)
        def _():
            inv_b = 1.0 / float(true_batch)
            mean = scale_ref[...] * inv_b
            var = jnp.maximum(shift_ref[...] * inv_b - mean * mean, 0.0)
            s = gamma_ref[...] * lax.rsqrt(var + BN_EPS)           # EUP rsqrt
            scale_ref[...] = s
            shift_ref[...] = beta_ref[...] - mean * s

    @pl.when(p == 1)
    def _apply():
        h = jnp.dot(x_ref[...], w1_ref[...],
                    preferred_element_type=jnp.float32)
        r = jnp.maximum(h * scale_ref[...] + shift_ref[...], 0.0)
        out = (jnp.dot(r.astype(w2_ref.dtype), w2_ref[...],
                       preferred_element_type=jnp.float32)
               + b2_ref[...])
        if lane_pack > 1:
            # (tb, out_dim) -> (tb//pack, out_dim*pack): lane-dense store;
            # contiguous row-major, so the wrapper-side inverse reshape is free.
            out = out.reshape(o_ref.shape)
        o_ref[...] = out.astype(o_ref.dtype)


def _forward_impl(x, w1, gamma, beta, w2, b2, *, tile_batch, matmul_dtype, pack):
    batch, in_dim = x.shape
    hid = w1.shape[0]
    out_dim = w2.shape[0]

    # Batch tile: multiple of 8 sublanes (and of 8*pack for the lane-dense
    # output reshape), capped at tile_batch.
    align = 8 * pack
    tb = min(_round_up(batch, align), _round_up(max(tile_batch, 1), align))
    b_pad = _round_up(batch, tb)
    n_tiles = b_pad // tb
    grid = (2, n_tiles)          # pass-major: pass 0 = stats, pass 1 = apply

    # Zero-pad the batch (padded rows contribute 0 to the BN sums because b1
    # is dropped) and cast matmul operands once in the wrapper.
    x_p = jnp.zeros((b_pad, in_dim), matmul_dtype).at[:batch].set(
        x.astype(matmul_dtype))
    w1_t = jnp.transpose(w1).astype(matmul_dtype)       # (in, hid)
    w2_t = jnp.transpose(w2).astype(matmul_dtype)       # (hid, out)
    gamma_2d = gamma.reshape(1, hid).astype(jnp.float32)
    beta_2d = beta.reshape(1, hid).astype(jnp.float32)
    b2_2d = b2.reshape(1, out_dim).astype(jnp.float32)

    x_spec = pl.BlockSpec((tb, in_dim), lambda p, i: (i, 0))
    w1_spec = pl.BlockSpec((in_dim, hid), lambda p, i: (0, 0))
    vec_spec = pl.BlockSpec((1, hid), lambda p, i: (0, 0))
    w2_spec = pl.BlockSpec((hid, out_dim), lambda p, i: (0, 0))
    b2_spec = pl.BlockSpec((1, out_dim), lambda p, i: (0, 0))

    # Lane-dense output: (b_pad//pack, out_dim*pack).  During the stats pass
    # (p == 0) every tile maps to output block 0, which is never written and
    # only flushed after the apply pass overwrites it -> no garbage writeback.
    out_cols = out_dim * pack
    out_spec = pl.BlockSpec((tb // pack, out_cols), lambda p, i: (i * p, 0))
    out_shape = jax.ShapeDtypeStruct((b_pad // pack, out_cols), jnp.float32)

    item = jnp.dtype(matmul_dtype).itemsize
    flops = (2 * b_pad * in_dim * hid * 2      # h = x @ W1, twice (both passes)
             + 2 * b_pad * hid * out_dim       # second linear
             + 7 * b_pad * hid)                # sums / BN affine / relu
    bytes_accessed = (2 * b_pad * in_dim * item            # x read per pass
                      + (in_dim * hid + hid * out_dim) * item
                      + 4 * hid * 4 + out_dim * 4
                      + b_pad * out_dim * 4)

    out = pl.pallas_call(
        functools.partial(_fused_kernel, true_batch=batch, lane_pack=pack),
        grid=grid,
        in_specs=[x_spec, w1_spec, vec_spec, vec_spec, w2_spec, b2_spec],
        out_specs=out_spec,
        out_shape=out_shape,
        scratch_shapes=[pltpu.VMEM((1, hid), jnp.float32),   # scale / sum
                        pltpu.VMEM((1, hid), jnp.float32)],  # shift / sumsq
        compiler_params=pltpu.CompilerParams(
            # Both axes sequential: stats accumulation and the stats->apply
            # ordering require it (scratch is shared across the whole grid).
            dimension_semantics=("arbitrary", "arbitrary"),
            vmem_limit_bytes=_pick_vmem_limit()),
        cost_estimate=pl.CostEstimate(
            flops=flops, transcendentals=hid, bytes_accessed=bytes_accessed),
    )(x_p, w1_t, gamma_2d, beta_2d, w2_t, b2_2d)

    # Contiguous row-major reshape back to (b_pad, out_dim): free.
    return out.reshape(b_pad, out_dim)[:batch]


def net_decoder_forward(x, w1, b1, gamma, beta, w2, b2, *,
                        tile_batch=4096, matmul_dtype=jnp.bfloat16,
                        lane_dense_output=None):
    """Forward pass of NetDecoder.

    x: (B, INPUT_DIM) f32.  Weights in PyTorch layout:
      w1 (HIDDEN, INPUT), b1 (HIDDEN,), gamma/beta (HIDDEN,),
      w2 (OUT, HIDDEN), b2 (OUT,).
    b1 is accepted for API parity but unused: it cancels exactly in
    training-mode BatchNorm.
    """
    del b1
    out_dim = w2.shape[0]

    dense_ok = out_dim < 128 and 128 % out_dim == 0
    if lane_dense_output is None:
        packs = ([128 // out_dim, 1] if dense_ok else [1])
    elif lane_dense_output and dense_ok:
        packs = [128 // out_dim]
    else:
        packs = [1]

    last_err = None
    for pack in packs:
        try:
            return _forward_impl(x, w1, gamma, beta, w2, b2,
                                 tile_batch=tile_batch,
                                 matmul_dtype=matmul_dtype, pack=pack)
        except Exception as e:   # noqa: BLE001 — fall back if the lane-dense
            last_err = e         # in-kernel relayout is rejected by Mosaic.
            continue
    raise last_err


def init_params(key, input_dim=INPUT_DIM, hidden_dim=HIDDEN_DIM,
                output_dim=OUTPUT_DIM):
    """Deterministic init mimicking PyTorch defaults (uniform bounds)."""
    k1, k2, k3, k4 = jax.random.split(key, 4)
    bound1 = 1.0 / jnp.sqrt(input_dim)
    bound2 = 1.0 / jnp.sqrt(hidden_dim)
    w1 = jax.random.uniform(k1, (hidden_dim, input_dim), jnp.float32,
                            -bound1, bound1)
    b1 = jax.random.uniform(k2, (hidden_dim,), jnp.float32, -bound1, bound1)
    gamma = jnp.ones((hidden_dim,), jnp.float32)      # BatchNorm1d weight
    beta = jnp.zeros((hidden_dim,), jnp.float32)      # BatchNorm1d bias
    w2 = jax.random.uniform(k3, (output_dim, hidden_dim), jnp.float32,
                            -bound2, bound2)
    b2 = jax.random.uniform(k4, (output_dim,), jnp.float32, -bound2, bound2)
    return w1, b1, gamma, beta, w2, b2


def reference_forward(x, w1, b1, gamma, beta, w2, b2):
    """Pure-JAX reference of the PyTorch forward (training-mode BatchNorm1d)."""
    h = x @ w1.T + b1
    mean = jnp.mean(h, axis=0, keepdims=True)
    var = jnp.mean((h - mean) ** 2, axis=0, keepdims=True)
    bn = (h - mean) / jnp.sqrt(var + BN_EPS) * gamma + beta
    r = jnp.maximum(bn, 0.0)
    return r @ w2.T + b2


if __name__ == "__main__":
    key = jax.random.PRNGKey(0)
    kx, kp = jax.random.split(key)

    batch = 200                          # non-multiple of the tile: padding
    x = jax.random.normal(kx, (batch, INPUT_DIM), dtype=jnp.float32)
    params = init_params(kp)
    ref = reference_forward(x, *params)

    # Exact-semantics check: f32 matmuls, small tile (tile_batch=64 -> 4 tiles)
    # so the cross-tile BN statistic accumulation, zero-row padding and the
    # lane-dense output packing are all exercised.
    out_f32 = jax.block_until_ready(
        net_decoder_forward(x, *params, tile_batch=64,
                            matmul_dtype=jnp.float32))
    assert out_f32.shape == (batch, OUTPUT_DIM), out_f32.shape
    assert jnp.allclose(out_f32, ref, atol=1e-4, rtol=1e-4), \
        float(jnp.max(jnp.abs(out_f32 - ref)))

    # Production config: bf16 MXU operands (v6e/v7x-native), f32 accum/BN math,
    # default large batch tile (single tile at this size).  Looser tolerance
    # per bf16 rounding; exactness is covered by the f32 run.
    out_bf16 = jax.block_until_ready(net_decoder_forward(x, *params))
    assert out_bf16.shape == (batch, OUTPUT_DIM), out_bf16.shape
    assert jnp.allclose(out_bf16, ref, atol=1e-1, rtol=1e-1), \
        float(jnp.max(jnp.abs(out_bf16 - ref)))

    print("KERNEL_OK")
</pallas_src>

<mosaic_0001>
module attributes {stable_mosaic.version = 11 : i64} {
  func.func @_fused_kernel(%arg0: i32, %arg1: i32, %arg2: memref<64x32xf32, #tpu.memory_space<vmem>>, %arg3: memref<32x128xf32, #tpu.memory_space<vmem>>, %arg4: memref<1x128xf32, #tpu.memory_space<vmem>>, %arg5: memref<1x128xf32, #tpu.memory_space<vmem>>, %arg6: memref<128x16xf32, #tpu.memory_space<vmem>>, %arg7: memref<1x16xf32, #tpu.memory_space<vmem>>, %arg8: memref<8x128xf32, #tpu.memory_space<vmem>>, %arg9: memref<1x128xf32, #tpu.memory_space<vmem>>, %arg10: memref<1x128xf32, #tpu.memory_space<vmem>>) attributes {dimension_semantics = [#tpu.dimension_semantics<arbitrary>, #tpu.dimension_semantics<arbitrary>], iteration_bounds = array<i64: 2, 4>, scalar_prefetch = 0 : i64, scratch_operands = 2 : i64, tpu.core_type = #tpu.core_type<tc>, window_params = [{transform_indices = @transform_0, window_bounds = array<i64: 64, 32>}, {pipeline_mode = #tpu.pipeline_mode<synchronous>, transform_indices = @transform_1, window_bounds = array<i64: 32, 128>}, {pipeline_mode = #tpu.pipeline_mode<synchronous>, transform_indices = @transform_2, window_bounds = array<i64: 1, 128>}, {pipeline_mode = #tpu.pipeline_mode<synchronous>, transform_indices = @transform_3, window_bounds = array<i64: 1, 128>}, {pipeline_mode = #tpu.pipeline_mode<synchronous>, transform_indices = @transform_4, window_bounds = array<i64: 128, 16>}, {pipeline_mode = #tpu.pipeline_mode<synchronous>, transform_indices = @transform_5, window_bounds = array<i64: 1, 16>}, {transform_indices = @transform_6, window_bounds = array<i64: 8, 128>}]} {
    %c0_i32 = arith.constant 0 : i32
    %0 = arith.cmpi eq, %arg0, %c0_i32 : i32
    %1 = arith.extui %0 : i1 to i32
    %c0_i32_0 = arith.constant 0 : i32
    %2 = arith.cmpi ne, %1, %c0_i32_0 : i32
    scf.if %2 {
      %c0_i32_2 = arith.constant 0 : i32
      %6 = arith.cmpi eq, %arg1, %c0_i32_2 : i32
      %7 = arith.extui %6 : i1 to i32
      %c0_i32_3 = arith.constant 0 : i32
      %8 = arith.cmpi ne, %7, %c0_i32_3 : i32
      scf.if %8 {
        %cst_18 = arith.constant 0.000000e+00 : f32
        %26 = vector.broadcast %cst_18 : f32 to vector<1x128xf32>
        %c0_19 = arith.constant 0 : index
        %c0_20 = arith.constant 0 : index
        %27 = vector.load %arg9[%c0_19, %c0_20] : memref<1x128xf32, #tpu.memory_space<vmem>>, vector<1x128xf32>
        tpu.vector_store %arg9[%c0_19, %c0_20], %26 {strides = array<i32>} : memref<1x128xf32, #tpu.memory_space<vmem>>, vector<1x128xf32>,
        %cst_21 = arith.constant 0.000000e+00 : f32
        %28 = vector.broadcast %cst_21 : f32 to vector<1x128xf32>
        %c0_22 = arith.constant 0 : index
        %c0_23 = arith.constant 0 : index
        %29 = vector.load %arg10[%c0_22, %c0_23] : memref<1x128xf32, #tpu.memory_space<vmem>>, vector<1x128xf32>
        tpu.vector_store %arg10[%c0_22, %c0_23], %28 {strides = array<i32>} : memref<1x128xf32, #tpu.memory_space<vmem>>, vector<1x128xf32>,
      } else {
      }
      %c0 = arith.constant 0 : index
      %c0_4 = arith.constant 0 : index
      %9 = vector.load %arg2[%c0, %c0_4] : memref<64x32xf32, #tpu.memory_space<vmem>>, vector<64x32xf32>
      %c0_5 = arith.constant 0 : index
      %c0_6 = arith.constant 0 : index
      %10 = vector.load %arg3[%c0_5, %c0_6] : memref<32x128xf32, #tpu.memory_space<vmem>>, vector<32x128xf32>
      %cst = arith.constant dense<0.000000e+00> : vector<64x128xf32>
      %11 = tpu.matmul %9, %10, %cst {dimension_numbers = #tpu.dot_dimension_numbers<[1], [0], [0], [1], [0, 0, 1, 1], [], []>} : vector<64x32xf32>, vector<32x128xf32>, vector<64x128xf32> -> vector<64x128xf32>
      %c0_7 = arith.constant 0 : index
      %c0_8 = arith.constant 0 : index
      %12 = vector.load %arg9[%c0_7, %c0_8] : memref<1x128xf32, #tpu.memory_space<vmem>>, vector<1x128xf32>
      %cst_9 = arith.constant dense<0.000000e+00> : vector<128xf32>
      %13 = vector.multi_reduction <add>, %11, %cst_9 [0] : vector<64x128xf32> to vector<128xf32>
      %14 = vector.shape_cast %13 : vector<128xf32> to vector<1x128xf32>
      %15 = arith.addf %12, %14 : vector<1x128xf32>
      %c0_10 = arith.constant 0 : index
      %c0_11 = arith.constant 0 : index
      %16 = vector.load %arg9[%c0_10, %c0_11] : memref<1x128xf32, #tpu.memory_space<vmem>>, vector<1x128xf32>
      tpu.vector_store %arg9[%c0_10, %c0_11], %15 {strides = array<i32>} : memref<1x128xf32, #tpu.memory_space<vmem>>, vector<1x128xf32>,
      %c0_12 = arith.constant 0 : index
      %c0_13 = arith.constant 0 : index
      %17 = vector.load %arg10[%c0_12, %c0_13] : memref<1x128xf32, #tpu.memory_space<vmem>>, vector<1x128xf32>
      %18 = arith.mulf %11, %11 : vector<64x128xf32>
      %cst_14 = arith.constant dense<0.000000e+00> : vector<128xf32>
      %19 = vector.multi_reduction <add>, %18, %cst_14 [0] : vector<64x128xf32> to vector<128xf32>
      %20 = vector.shape_cast %19 : vector<128xf32> to vector<1x128xf32>
      %21 = arith.addf %17, %20 : vector<1x128xf32>
      %c0_15 = arith.constant 0 : index
      %c0_16 = arith.constant 0 : index
      %22 = vector.load %arg10[%c0_15, %c0_16] : memref<1x128xf32, #tpu.memory_space<vmem>>, vector<1x128xf32>
      tpu.vector_store %arg10[%c0_15, %c0_16], %21 {strides = array<i32>} : memref<1x128xf32, #tpu.memory_space<vmem>>, vector<1x128xf32>,
      %c3_i32 = arith.constant 3 : i32
      %23 = arith.cmpi eq, %arg1, %c3_i32 : i32
      %24 = arith.extui %23 : i1 to i32
      %c0_i32_17 = arith.constant 0 : i32
      %25 = arith.cmpi ne, %24, %c0_i32_17 : i32
      scf.if %25 {
        %c0_18 = arith.constant 0 : index
        %c0_19 = arith.constant 0 : index
        %26 = vector.load %arg9[%c0_18, %c0_19] : memref<1x128xf32, #tpu.memory_space<vmem>>, vector<1x128xf32>
        %cst_20 = arith.constant 5.000000e-03 : f32
        %27 = vector.broadcast %cst_20 : f32 to vector<1x128xf32>
        %28 = arith.mulf %26, %27 : vector<1x128xf32>
        %c0_21 = arith.constant 0 : index
        %c0_22 = arith.constant 0 : index
        %29 = vector.load %arg10[%c0_21, %c0_22] : memref<1x128xf32, #tpu.memory_space<vmem>>, vector<1x128xf32>
        %cst_23 = arith.constant 5.000000e-03 : f32
        %30 = vector.broadcast %cst_23 : f32 to vector<1x128xf32>
        %31 = arith.mulf %29, %30 : vector<1x128xf32>
        %32 = arith.mulf %28, %28 : vector<1x128xf32>
        %33 = arith.subf %31, %32 : vector<1x128xf32>
        %cst_24 = arith.constant 0.000000e+00 : f32
        %34 = vector.broadcast %cst_24 : f32 to vector<1x128xf32>
        %35 = arith.maximumf %33, %34 : vector<1x128xf32>
        %c0_25 = arith.constant 0 : index
        %c0_26 = arith.constant 0 : index
        %36 = vector.load %arg4[%c0_25, %c0_26] : memref<1x128xf32, #tpu.memory_space<vmem>>, vector<1x128xf32>
        %cst_27 = arith.constant 9.99999974E-6 : f32
        %37 = vector.broadcast %cst_27 : f32 to vector<1x128xf32>
        %38 = arith.addf %35, %37 : vector<1x128xf32>
        %39 = math.rsqrt %38 : vector<1x128xf32>
        %40 = arith.mulf %36, %39 : vector<1x128xf32>
        %c0_28 = arith.constant 0 : index
        %c0_29 = arith.constant 0 : index
        %41 = vector.load %arg9[%c0_28, %c0_29] : memref<1x128xf32, #tpu.memory_space<vmem>>, vector<1x128xf32>
        tpu.vector_store %arg9[%c0_28, %c0_29], %40 {strides = array<i32>} : memref<1x128xf32, #tpu.memory_space<vmem>>, vector<1x128xf32>,
        %c0_30 = arith.constant 0 : index
        %c0_31 = arith.constant 0 : index
        %42 = vector.load %arg5[%c0_30, %c0_31] : memref<1x128xf32, #tpu.memory_space<vmem>>, vector<1x128xf32>
        %43 = arith.mulf %28, %40 : vector<1x128xf32>
        %44 = arith.subf %42, %43 : vector<1x128xf32>
        %c0_32 = arith.constant 0 : index
        %c0_33 = arith.constant 0 : index
        %45 = vector.load %arg10[%c0_32, %c0_33] : memref<1x128xf32, #tpu.memory_space<vmem>>, vector<1x128xf32>
        tpu.vector_store %arg10[%c0_32, %c0_33], %44 {strides = array<i32>} : memref<1x128xf32, #tpu.memory_space<vmem>>, vector<1x128xf32>,
      } else {
      }
    } else {
    }
    %c1_i32 = arith.constant 1 : i32
    %3 = arith.cmpi eq, %arg0, %c1_i32 : i32
    %4 = arith.extui %3 : i1 to i32
    %c0_i32_1 = arith.constant 0 : i32
    %5 = arith.cmpi ne, %4, %c0_i32_1 : i32
    scf.if %5 {
      %c0 = arith.constant 0 : index
      %c0_2 = arith.constant 0 : index
      %6 = vector.load %arg2[%c0, %c0_2] : memref<64x32xf32, #tpu.memory_space<vmem>>, vector<64x32xf32>
      %c0_3 = arith.constant 0 : index
      %c0_4 = arith.constant 0 : index
      %7 = vector.load %arg3[%c0_3, %c0_4] : memref<32x128xf32, #tpu.memory_space<vmem>>, vector<32x128xf32>
      %cst = arith.constant dense<0.000000e+00> : vector<64x128xf32>
      %8 = tpu.matmul %6, %7, %cst {dimension_numbers = #tpu.dot_dimension_numbers<[1], [0], [0], [1], [0, 0, 1, 1], [], []>} : vector<64x32xf32>, vector<32x128xf32>, vector<64x128xf32> -> vector<64x128xf32>
      %c0_5 = arith.constant 0 : index
      %c0_6 = arith.constant 0 : index
      %9 = vector.load %arg9[%c0_5, %c0_6] : memref<1x128xf32, #tpu.memory_space<vmem>>, vector<1x128xf32>
      %10 = vector.broadcast %9 : vector<1x128xf32> to vector<64x128xf32>
      %11 = arith.mulf %8, %10 : vector<64x128xf32>
      %c0_7 = arith.constant 0 : index
      %c0_8 = arith.constant 0 : index
      %12 = vector.load %arg10[%c0_7, %c0_8] : memref<1x128xf32, #tpu.memory_space<vmem>>, vector<1x128xf32>
      %13 = vector.broadcast %12 : vector<1x128xf32> to vector<64x128xf32>
      %14 = arith.addf %11, %13 : vector<64x128xf32>
      %cst_9 = arith.constant 0.000000e+00 : f32
      %15 = vector.broadcast %cst_9 : f32 to vector<64x128xf32>
      %16 = arith.maximumf %14, %15 : vector<64x128xf32>
      %c0_10 = arith.constant 0 : index
      %c0_11 = arith.constant 0 : index
      %17 = vector.load %arg6[%c0_10, %c0_11] : memref<128x16xf32, #tpu.memory_space<vmem>>, vector<128x16xf32>
      %cst_12 = arith.constant dense<0.000000e+00> : vector<64x16xf32>
      %18 = tpu.matmul %16, %17, %cst_12 {dimension_numbers = #tpu.dot_dimension_numbers<[1], [0], [0], [1], [0, 0, 1, 1], [], []>} : vector<64x128xf32>, vector<128x16xf32>, vector<64x16xf32> -> vector<64x16xf32>
      %c0_13 = arith.constant 0 : index
      %c0_14 = arith.constant 0 : index
      %19 = vector.load %arg7[%c0_13, %c0_14] : memref<1x16xf32, #tpu.memory_space<vmem>>, vector<1x16xf32>
      %20 = vector.broadcast %19 : vector<1x16xf32> to vector<64x16xf32>
      %21 = arith.addf %18, %20 : vector<64x16xf32>
      %22 = vector.shape_cast %21 : vector<64x16xf32> to vector<8x128xf32>
      %c0_15 = arith.constant 0 : index
      %c0_16 = arith.constant 0 : index
      %23 = vector.load %arg8[%c0_15, %c0_16] : memref<8x128xf32, #tpu.memory_space<vmem>>, vector<8x128xf32>
      tpu.vector_store %arg8[%c0_15, %c0_16], %22 {strides = array<i32>} : memref<8x128xf32, #tpu.memory_space<vmem>>, vector<8x128xf32>,
    } else {
    }
    return
  }
  func.func @transform_0(%arg0: i32, %arg1: i32) -> (i32, i32) {
    %c0_i32 = arith.constant 0 : i32
    %c0_i32_0 = arith.constant 0 : i32
    return %arg1, %c0_i32 : i32, i32
  }
  func.func @transform_1(%arg0: i32, %arg1: i32) -> (i32, i32) {
    %c0_i32 = arith.constant 0 : i32
    %c0_i32_0 = arith.constant 0 : i32
    %c0_i32_1 = arith.constant 0 : i32
    return %c0_i32, %c0_i32_0 : i32, i32
  }
  func.func @transform_2(%arg0: i32, %arg1: i32) -> (i32, i32) {
    %c0_i32 = arith.constant 0 : i32
    %c0_i32_0 = arith.constant 0 : i32
    %c0_i32_1 = arith.constant 0 : i32
    return %c0_i32, %c0_i32_0 : i32, i32
  }
  func.func @transform_3(%arg0: i32, %arg1: i32) -> (i32, i32) {
    %c0_i32 = arith.constant 0 : i32
    %c0_i32_0 = arith.constant 0 : i32
    %c0_i32_1 = arith.constant 0 : i32
    return %c0_i32, %c0_i32_0 : i32, i32
  }
  func.func @transform_4(%arg0: i32, %arg1: i32) -> (i32, i32) {
    %c0_i32 = arith.constant 0 : i32
    %c0_i32_0 = arith.constant 0 : i32
    %c0_i32_1 = arith.constant 0 : i32
    return %c0_i32, %c0_i32_0 : i32, i32
  }
  func.func @transform_5(%arg0: i32, %arg1: i32) -> (i32, i32) {
    %c0_i32 = arith.constant 0 : i32
    %c0_i32_0 = arith.constant 0 : i32
    %c0_i32_1 = arith.constant 0 : i32
    return %c0_i32, %c0_i32_0 : i32, i32
  }
  func.func @transform_6(%arg0: i32, %arg1: i32) -> (i32, i32) {
    %0 = arith.muli %arg1, %arg0 : i32
    %c0_i32 = arith.constant 0 : i32
    %c0_i32_0 = arith.constant 0 : i32
    return %0, %c0_i32 : i32, i32
  }
}

module attributes {stable_mosaic.version = 11 : i64} {
  func.func @_fused_kernel(%arg0: i32, %arg1: i32, %arg2: memref<64x32xf32, #tpu.memory_space<vmem>>, %arg3: memref<32x128xf32, #tpu.memory_space<vmem>>, %arg4: memref<1x128xf32, #tpu.memory_space<vmem>>, %arg5: memref<1x128xf32, #tpu.memory_space<vmem>>, %arg6: memref<128x16xf32, #tpu.memory_space<vmem>>, %arg7: memref<1x16xf32, #tpu.memory_space<vmem>>, %arg8: memref<64x16xf32, #tpu.memory_space<vmem>>, %arg9: memref<1x128xf32, #tpu.memory_space<vmem>>, %arg10: memref<1x128xf32, #tpu.memory_space<vmem>>) attributes {dimension_semantics = [#tpu.dimension_semantics<arbitrary>, #tpu.dimension_semantics<arbitrary>], iteration_bounds = array<i64: 2, 4>, scalar_prefetch = 0 : i64, scratch_operands = 2 : i64, tpu.core_type = #tpu.core_type<tc>, window_params = [{transform_indices = @transform_0, window_bounds = array<i64: 64, 32>}, {pipeline_mode = #tpu.pipeline_mode<synchronous>, transform_indices = @transform_1, window_bounds = array<i64: 32, 128>}, {pipeline_mode = #tpu.pipeline_mode<synchronous>, transform_indices = @transform_2, window_bounds = array<i64: 1, 128>}, {pipeline_mode = #tpu.pipeline_mode<synchronous>, transform_indices = @transform_3, window_bounds = array<i64: 1, 128>}, {pipeline_mode = #tpu.pipeline_mode<synchronous>, transform_indices = @transform_4, window_bounds = array<i64: 128, 16>}, {pipeline_mode = #tpu.pipeline_mode<synchronous>, transform_indices = @transform_5, window_bounds = array<i64: 1, 16>}, {transform_indices = @transform_6, window_bounds = array<i64: 64, 16>}]} {
    %c0_i32 = arith.constant 0 : i32
    %0 = arith.cmpi eq, %arg0, %c0_i32 : i32
    %1 = arith.extui %0 : i1 to i32
    %c0_i32_0 = arith.constant 0 : i32
    %2 = arith.cmpi ne, %1, %c0_i32_0 : i32
    scf.if %2 {
      %c0_i32_2 = arith.constant 0 : i32
      %6 = arith.cmpi eq, %arg1, %c0_i32_2 : i32
      %7 = arith.extui %6 : i1 to i32
      %c0_i32_3 = arith.constant 0 : i32
      %8 = arith.cmpi ne, %7, %c0_i32_3 : i32
      scf.if %8 {
        %cst_18 = arith.constant 0.000000e+00 : f32
        %26 = vector.broadcast %cst_18 : f32 to vector<1x128xf32>
        %c0_19 = arith.constant 0 : index
        %c0_20 = arith.constant 0 : index
        %27 = vector.load %arg9[%c0_19, %c0_20] : memref<1x128xf32, #tpu.memory_space<vmem>>, vector<1x128xf32>
        tpu.vector_store %arg9[%c0_19, %c0_20], %26 {strides = array<i32>} : memref<1x128xf32, #tpu.memory_space<vmem>>, vector<1x128xf32>,
        %cst_21 = arith.constant 0.000000e+00 : f32
        %28 = vector.broadcast %cst_21 : f32 to vector<1x128xf32>
        %c0_22 = arith.constant 0 : index
        %c0_23 = arith.constant 0 : index
        %29 = vector.load %arg10[%c0_22, %c0_23] : memref<1x128xf32, #tpu.memory_space<vmem>>, vector<1x128xf32>
        tpu.vector_store %arg10[%c0_22, %c0_23], %28 {strides = array<i32>} : memref<1x128xf32, #tpu.memory_space<vmem>>, vector<1x128xf32>,
      } else {
      }
      %c0 = arith.constant 0 : index
      %c0_4 = arith.constant 0 : index
      %9 = vector.load %arg2[%c0, %c0_4] : memref<64x32xf32, #tpu.memory_space<vmem>>, vector<64x32xf32>
      %c0_5 = arith.constant 0 : index
      %c0_6 = arith.constant 0 : index
      %10 = vector.load %arg3[%c0_5, %c0_6] : memref<32x128xf32, #tpu.memory_space<vmem>>, vector<32x128xf32>
      %cst = arith.constant dense<0.000000e+00> : vector<64x128xf32>
      %11 = tpu.matmul %9, %10, %cst {dimension_numbers = #tpu.dot_dimension_numbers<[1], [0], [0], [1], [0, 0, 1, 1], [], []>} : vector<64x32xf32>, vector<32x128xf32>, vector<64x128xf32> -> vector<64x128xf32>
      %c0_7 = arith.constant 0 : index
      %c0_8 = arith.constant 0 : index
      %12 = vector.load %arg9[%c0_7, %c0_8] : memref<1x128xf32, #tpu.memory_space<vmem>>, vector<1x128xf32>
      %cst_9 = arith.constant dense<0.000000e+00> : vector<128xf32>
      %13 = vector.multi_reduction <add>, %11, %cst_9 [0] : vector<64x128xf32> to vector<128xf32>
      %14 = vector.shape_cast %13 : vector<128xf32> to vector<1x128xf32>
      %15 = arith.addf %12, %14 : vector<1x128xf32>
      %c0_10 = arith.constant 0 : index
      %c0_11 = arith.constant 0 : index
      %16 = vector.load %arg9[%c0_10, %c0_11] : memref<1x128xf32, #tpu.memory_space<vmem>>, vector<1x128xf32>
      tpu.vector_store %arg9[%c0_10, %c0_11], %15 {strides = array<i32>} : memref<1x128xf32, #tpu.memory_space<vmem>>, vector<1x128xf32>,
      %c0_12 = arith.constant 0 : index
      %c0_13 = arith.constant 0 : index
      %17 = vector.load %arg10[%c0_12, %c0_13] : memref<1x128xf32, #tpu.memory_space<vmem>>, vector<1x128xf32>
      %18 = arith.mulf %11, %11 : vector<64x128xf32>
      %cst_14 = arith.constant dense<0.000000e+00> : vector<128xf32>
      %19 = vector.multi_reduction <add>, %18, %cst_14 [0] : vector<64x128xf32> to vector<128xf32>
      %20 = vector.shape_cast %19 : vector<128xf32> to vector<1x128xf32>
      %21 = arith.addf %17, %20 : vector<1x128xf32>
      %c0_15 = arith.constant 0 : index
      %c0_16 = arith.constant 0 : index
      %22 = vector.load %arg10[%c0_15, %c0_16] : memref<1x128xf32, #tpu.memory_space<vmem>>, vector<1x128xf32>
      tpu.vector_store %arg10[%c0_15, %c0_16], %21 {strides = array<i32>} : memref<1x128xf32, #tpu.memory_space<vmem>>, vector<1x128xf32>,
      %c3_i32 = arith.constant 3 : i32
      %23 = arith.cmpi eq, %arg1, %c3_i32 : i32
      %24 = arith.extui %23 : i1 to i32
      %c0_i32_17 = arith.constant 0 : i32
      %25 = arith.cmpi ne, %24, %c0_i32_17 : i32
      scf.if %25 {
        %c0_18 = arith.constant 0 : index
        %c0_19 = arith.constant 0 : index
        %26 = vector.load %arg9[%c0_18, %c0_19] : memref<1x128xf32, #tpu.memory_space<vmem>>, vector<1x128xf32>
        %cst_20 = arith.constant 5.000000e-03 : f32
        %27 = vector.broadcast %cst_20 : f32 to vector<1x128xf32>
        %28 = arith.mulf %26, %27 : vector<1x128xf32>
        %c0_21 = arith.constant 0 : index
        %c0_22 = arith.constant 0 : index
        %29 = vector.load %arg10[%c0_21, %c0_22] : memref<1x128xf32, #tpu.memory_space<vmem>>, vector<1x128xf32>
        %cst_23 = arith.constant 5.000000e-03 : f32
        %30 = vector.broadcast %cst_23 : f32 to vector<1x128xf32>
        %31 = arith.mulf %29, %30 : vector<1x128xf32>
        %32 = arith.mulf %28, %28 : vector<1x128xf32>
        %33 = arith.subf %31, %32 : vector<1x128xf32>
        %cst_24 = arith.constant 0.000000e+00 : f32
        %34 = vector.broadcast %cst_24 : f32 to vector<1x128xf32>
        %35 = arith.maximumf %33, %34 : vector<1x128xf32>
        %c0_25 = arith.constant 0 : index
        %c0_26 = arith.constant 0 : index
        %36 = vector.load %arg4[%c0_25, %c0_26] : memref<1x128xf32, #tpu.memory_space<vmem>>, vector<1x128xf32>
        %cst_27 = arith.constant 9.99999974E-6 : f32
        %37 = vector.broadcast %cst_27 : f32 to vector<1x128xf32>
        %38 = arith.addf %35, %37 : vector<1x128xf32>
        %39 = math.rsqrt %38 : vector<1x128xf32>
        %40 = arith.mulf %36, %39 : vector<1x128xf32>
        %c0_28 = arith.constant 0 : index
        %c0_29 = arith.constant 0 : index
        %41 = vector.load %arg9[%c0_28, %c0_29] : memref<1x128xf32, #tpu.memory_space<vmem>>, vector<1x128xf32>
        tpu.vector_store %arg9[%c0_28, %c0_29], %40 {strides = array<i32>} : memref<1x128xf32, #tpu.memory_space<vmem>>, vector<1x128xf32>,
        %c0_30 = arith.constant 0 : index
        %c0_31 = arith.constant 0 : index
        %42 = vector.load %arg5[%c0_30, %c0_31] : memref<1x128xf32, #tpu.memory_space<vmem>>, vector<1x128xf32>
        %43 = arith.mulf %28, %40 : vector<1x128xf32>
        %44 = arith.subf %42, %43 : vector<1x128xf32>
        %c0_32 = arith.constant 0 : index
        %c0_33 = arith.constant 0 : index
        %45 = vector.load %arg10[%c0_32, %c0_33] : memref<1x128xf32, #tpu.memory_space<vmem>>, vector<1x128xf32>
        tpu.vector_store %arg10[%c0_32, %c0_33], %44 {strides = array<i32>} : memref<1x128xf32, #tpu.memory_space<vmem>>, vector<1x128xf32>,
      } else {
      }
    } else {
    }
    %c1_i32 = arith.constant 1 : i32
    %3 = arith.cmpi eq, %arg0, %c1_i32 : i32
    %4 = arith.extui %3 : i1 to i32
    %c0_i32_1 = arith.constant 0 : i32
    %5 = arith.cmpi ne, %4, %c0_i32_1 : i32
    scf.if %5 {
      %c0 = arith.constant 0 : index
      %c0_2 = arith.constant 0 : index
      %6 = vector.load %arg2[%c0, %c0_2] : memref<64x32xf32, #tpu.memory_space<vmem>>, vector<64x32xf32>
      %c0_3 = arith.constant 0 : index
      %c0_4 = arith.constant 0 : index
      %7 = vector.load %arg3[%c0_3, %c0_4] : memref<32x128xf32, #tpu.memory_space<vmem>>, vector<32x128xf32>
      %cst = arith.constant dense<0.000000e+00> : vector<64x128xf32>
      %8 = tpu.matmul %6, %7, %cst {dimension_numbers = #tpu.dot_dimension_numbers<[1], [0], [0], [1], [0, 0, 1, 1], [], []>} : vector<64x32xf32>, vector<32x128xf32>, vector<64x128xf32> -> vector<64x128xf32>
      %c0_5 = arith.constant 0 : index
      %c0_6 = arith.constant 0 : index
      %9 = vector.load %arg9[%c0_5, %c0_6] : memref<1x128xf32, #tpu.memory_space<vmem>>, vector<1x128xf32>
      %10 = vector.broadcast %9 : vector<1x128xf32> to vector<64x128xf32>
      %11 = arith.mulf %8, %10 : vector<64x128xf32>
      %c0_7 = arith.constant 0 : index
      %c0_8 = arith.constant 0 : index
      %12 = vector.load %arg10[%c0_7, %c0_8] : memref<1x128xf32, #tpu.memory_space<vmem>>, vector<1x128xf32>
      %13 = vector.broadcast %12 : vector<1x128xf32> to vector<64x128xf32>
      %14 = arith.addf %11, %13 : vector<64x128xf32>
      %cst_9 = arith.constant 0.000000e+00 : f32
      %15 = vector.broadcast %cst_9 : f32 to vector<64x128xf32>
      %16 = arith.maximumf %14, %15 : vector<64x128xf32>
      %c0_10 = arith.constant 0 : index
      %c0_11 = arith.constant 0 : index
      %17 = vector.load %arg6[%c0_10, %c0_11] : memref<128x16xf32, #tpu.memory_space<vmem>>, vector<128x16xf32>
      %cst_12 = arith.constant dense<0.000000e+00> : vector<64x16xf32>
      %18 = tpu.matmul %16, %17, %cst_12 {dimension_numbers = #tpu.dot_dimension_numbers<[1], [0], [0], [1], [0, 0, 1, 1], [], []>} : vector<64x128xf32>, vector<128x16xf32>, vector<64x16xf32> -> vector<64x16xf32>
      %c0_13 = arith.constant 0 : index
      %c0_14 = arith.constant 0 : index
      %19 = vector.load %arg7[%c0_13, %c0_14] : memref<1x16xf32, #tpu.memory_space<vmem>>, vector<1x16xf32>
      %20 = vector.broadcast %19 : vector<1x16xf32> to vector<64x16xf32>
      %21 = arith.addf %18, %20 : vector<64x16xf32>
      %c0_15 = arith.constant 0 : index
      %c0_16 = arith.constant 0 : index
      %22 = vector.load %arg8[%c0_15, %c0_16] : memref<64x16xf32, #tpu.memory_space<vmem>>, vector<64x16xf32>
      tpu.vector_store %arg8[%c0_15, %c0_16], %21 {strides = array<i32>} : memref<64x16xf32, #tpu.memory_space<vmem>>, vector<64x16xf32>,
    } else {
    }
    return
  }
  func.func @transform_0(%arg0: i32, %arg1: i32) -> (i32, i32) {
    %c0_i32 = arith.constant 0 : i32
    %c0_i32_0 = arith.constant 0 : i32
    return %arg1, %c0_i32 : i32, i32
  }
  func.func @transform_1(%arg0: i32, %arg1: i32) -> (i32, i32) {
    %c0_i32 = arith.constant 0 : i32
    %c0_i32_0 = arith.constant 0 : i32
    %c0_i32_1 = arith.constant 0 : i32
    return %c0_i32, %c0_i32_0 : i32, i32
  }
  func.func @transform_2(%arg0: i32, %arg1: i32) -> (i32, i32) {
    %c0_i32 = arith.constant 0 : i32
    %c0_i32_0 = arith.constant 0 : i32
    %c0_i32_1 = arith.constant 0 : i32
    return %c0_i32, %c0_i32_0 : i32, i32
  }
  func.func @transform_3(%arg0: i32, %arg1: i32) -> (i32, i32) {
    %c0_i32 = arith.constant 0 : i32
    %c0_i32_0 = arith.constant 0 : i32
    %c0_i32_1 = arith.constant 0 : i32
    return %c0_i32, %c0_i32_0 : i32, i32
  }
  func.func @transform_4(%arg0: i32, %arg1: i32) -> (i32, i32) {
    %c0_i32 = arith.constant 0 : i32
    %c0_i32_0 = arith.constant 0 : i32
    %c0_i32_1 = arith.constant 0 : i32
    return %c0_i32, %c0_i32_0 : i32, i32
  }
  func.func @transform_5(%arg0: i32, %arg1: i32) -> (i32, i32) {
    %c0_i32 = arith.constant 0 : i32
    %c0_i32_0 = arith.constant 0 : i32
    %c0_i32_1 = arith.constant 0 : i32
    return %c0_i32, %c0_i32_0 : i32, i32
  }
  func.func @transform_6(%arg0: i32, %arg1: i32) -> (i32, i32) {
    %0 = arith.muli %arg1, %arg0 : i32
    %c0_i32 = arith.constant 0 : i32
    %c0_i32_0 = arith.constant 0 : i32
    return %0, %c0_i32 : i32, i32
  }
}

</mosaic_0001>

<bundles_post_ra>
// kernel: tpu_custom_call.1
= control target key start
LH: loop header
LB: loop body
LE: loop exit
PB: predicated region body
PF: predicated region fallthrough
CT: control target
= control target key end

     0   :  { %s1229_s21 = smov 0   ;;  %s1231_s22 = smov 0   ;;  %s1424_s0 = inlined_call_operand.vmem [shape: f32[256,32], index: 0, kind: input, shape index: {}]   ;;  %s1425_s1 = inlined_call_operand.vmem [shape: f32[32,128], index: 1, kind: input, shape index: {}]   ;;  %s1426_s2 = inlined_call_operand.vmem [shape: f32[1,128], index: 2, kind: input, shape index: {}]   ;;  %s1427_s3 = inlined_call_operand.vmem [shape: f32[1,128], index: 3, kind: input, shape index: {}]   ;;  %s1428_s4 = inlined_call_operand.vmem [shape: f32[128,16], index: 4, kind: input, shape index: {}]   ;;  %s1429_s5 = inlined_call_operand.vmem [shape: f32[1,16], index: 5, kind: input, shape index: {}]   ;;  %s1430_s6 = inlined_call_operand.vmem [shape: f32[256,16], index: 6, kind: output, shape index: {}]  }
   0x1   :  { %s1233_s23 = smov 0   ;;  %s1235_s24 = smov 0  }
   0x2   :  { %s1237_s25 = smov 0  }
   0x3 LB: > { %s25_s26 = sadd.s32 1, %s1183_s23  ;;  %s28_s27 = sadd.s32 1, %s1187_s24  ;;  %s1191_s25 = sphi %s1237_s25, %s16_s25   ;;  %s1187_s24 = sphi %s1235_s24, %s1434_s24   ;;  %s1183_s23 = sphi %s1233_s23, %s1433_s23   ;;  %s1179_s22 = sphi %s1231_s22, %s1432_s22   ;;  %s1175_s21 = sphi %s1229_s21, %s1431_s21  }
   0x4   : > { %p26_p0 = scmp.ge.s32.totalorder %s25_s26, 4  ;;  %p880_p1 = scmp.ge.s32.totalorder %s1191_s25, 1 }
   0x5   : > { %p227_p2 = scmp.lt.s32.totalorder %s1191_s25, 9 }
   0x6   : > { %s1436_s26 = smov (%p26_p0, %s25_s26), 0  ;;  %s1438_s27 = smov (!%p26_p0, %s28_s27), %s1187_s24 }
   0x7   : > { %p228_p3 = pnand %p880_p1, %p227_p2  ;;  %p30_p4 = scmp.ge.s32.totalorder %s1438_s27, 2 }
   0x8   : > { %s881_s28 = sshll.u32 (!%p228_p3), %s1175_s21, 3  ;;  %s264_s29 = smul.u32 (!%p228_p3), %s1175_s21, %s1179_s22 }
   0x9   : > { %s1440_s27 = smov (%p30_p4, %s1438_s27), 0  ;;  %231 = sbr.rel (%p228_p3) target bundleno = 783 (0x30f), region = 44 }
   0xa   : > { %p259_p5 = scmp.lt.s32.totalorder (!%p228_p3), %s881_s28, 31  ;;  %s883_s30 = sshll.u32 (!%p228_p3), %s264_s29, 3 }
   0xb   : > { %p266_p6 = scmp.lt.s32.totalorder (!%p228_p3), %s883_s30, 31  ;;  %p885_p7 = scmp.ne.s32.totalorder (!%p228_p3), %s1179_s22, 0 }
  0x10   : > { %s1442_s28 = smov (!%p259_p5, %s881_s28), 31  ;;  %s1444_s30 = smov (!%p266_p6, %s883_s30), 31 }
  0x11   : > { %s882_s7 = sshll.u32 %s1442_s28, 3  ;;  %s884_s11 = sshll.u32 %s1444_s30, 3 }
  0x12   : > { %s1269_s10 = scalar_lea.vmem %s1424_s0, %s882_s7  ;;  %s1274_s14 = scalar_lea.vmem %s1430_s6, %s884_s11 }
  0x13   : > { %275 = sbr.rel (%p885_p7) target bundleno = 323 (0x143), region = 48  ;;  %p886_p8 = scmp.ne.s32.totalorder (!%p885_p7), %s1175_s21, 0 }
  0x1a   : > { %279 = sbr.rel (%p886_p8) target bundleno = 33 (0x21), region = 52  ;;  %v1193_v0 = vmov (!%p886_p8), 0.0  }
  0x1b   : > { %280 = vst [vmem:[#allocation2] sm:$0x1] (!%p886_p8), %v1193_v0  ;;  %281 = vst [vmem:[#allocation3] sm:$0x1] (!%p886_p8), %v1193_v0 }
  0x21 PF: > { %v290_v1 = vld [vmem:[%s1425_s1] sm:$0xff]  ;;  %v291_v2 = vld [vmem:[%s1425_s1 + $0x8] sm:$0xff]  ;;  %v292_v3 = vld [vmem:[%s1425_s1 + $0x10] sm:$0xff]  ;;  %vm294_vm0 = vcmask 261120   ;;  %p895_p9 = scmp.ne.s32.totalorder %s1175_s21, 3 }
  0x22   : > { %v1042_v4 = vpack.c.bf16 %v291_v2, %v290_v1  ;;  %v293_v5 = vld [vmem:[%s1425_s1 + $0x18] sm:$0xff]  ;;  %v282_v6 = vld [vmem:[%s1269_s10] sm:$0xff]  ;;  %v283_v9 = vld [vmem:[%s1269_s10 + $0x8] sm:$0xff] }
  0x23   : > { %v1046_v7 = vpack.c.bf16 %v293_v5, %v292_v3  ;;  %966 = vmatprep.mubr.msk.f32.mxu0 %vm294_vm0, %v282_v6  ;;  %v286_v8 = vld [vmem:[%s1269_s10 + $0x20] sm:$0xff]  ;;  %v287_v10 = vld [vmem:[%s1269_s10 + $0x28] sm:$0xff]  ;;  %v284_v11 = vld [vmem:[%s1269_s10 + $0x10] sm:$0xff] }
  0x24   : > { %1043 = vmatprep.subr.bf16.mxu0 %v1042_v4  ;;  %1090 = vmatprep.subr.bf16.mxu1 %v1042_v4  ;;  %v288_v12 = vld [vmem:[%s1269_s10 + $0x30] sm:$0xff]  ;;  %v285_v13 = vld [vmem:[%s1269_s10 + $0x18] sm:$0xff]  ;;  %v424_v54 = vld [vmem:[#allocation2] sm:$0x1] }
  0x25   : > { %1045 = vmatpush3.bf16.msra.mxu0 %v1042_v4  ;;  %1092 = vmatpush3.bf16.msra.mxu1 %v1042_v4  ;;  %v289_v14 = vld [vmem:[%s1269_s10 + $0x38] sm:$0xff]  ;;  %v440_v57 = vld [vmem:[#allocation3] sm:$0x1]  ;;  %v475_v5 = vld [vmem:[%s1426_s2] sm:$0x1] (!%p895_p9) }
  0x26   : > { %1047 = vmatprep.subr.bf16.mxu0 %v1046_v7  ;;  %1091 = vmatprep.subr.bf16.mxu1 %v1046_v7 }
  0x27   : > { %972 = vmatprep.mubr.msk.f32.mxu1 %vm294_vm0, %v286_v8  ;;  %v480_v8 = vld [vmem:[%s1427_s3] sm:$0x1] (!%p895_p9) }
  0x29   : > { %1049 = vmatpush3.bf16.msra.mxu0 %v1046_v7  ;;  %1093 = vmatpush3.bf16.msra.mxu1 %v1046_v7 }
  0x2c   : > { %967 = vmatmul.mubr.msk.f32.vlgmr.msra.gmra.mrb[0].mxu0 %vm294_vm0, %v283_v9  ;;  %973 = vmatmul.mubr.msk.f32.vlgmr.msra.gmra.mrb[0].mxu1 %vm294_vm0, %v287_v10 }
  0x2d   : > { %969 = vmatprep.mubr.msk.f32.mxu0 %vm294_vm0, %v284_v11  ;;  %975 = vmatprep.mubr.msk.f32.mxu1 %vm294_vm0, %v288_v12 }
  0x30   : > { %970 = vmatmul.mubr.msk.f32.gmra.mrb[2].mxu0 %vm294_vm0, %v285_v13  ;;  %976 = vmatmul.mubr.msk.f32.gmra.mrb[2].mxu1 %vm294_vm0, %v289_v14 }
  0xff   : > { %v968_v15 = vpop.f32.mrb[0].mxu0  ;;  %v974_v16 = vpop.f32.mrb[0].mxu1 }
 0x100   : > { %v442_v17 = vmul.f32 %v968_v15, %v968_v15  ;;  %v385_v18 = vpop.f32.mrb[1].mxu0  ;;  %v405_v19 = vpop.f32.mrb[1].mxu1  ;;  %v446_v35 = vmul.f32 %v974_v16, %v974_v16 }
 0x101   : > { %v425_v20 = vadd.f32 %v968_v15, %v385_v18  ;;  %v441_v21 = vmul.f32 %v385_v18, %v385_v18  ;;  %v445_v32 = vmul.f32 %v405_v19, %v405_v19 }
 0x103   : > { %v449_v22 = vadd.f32 %v442_v17, %v441_v21  ;;  %v971_v23 = vpop.f32.mrb[2].mxu0  ;;  %v977_v24 = vpop.f32.mrb[2].mxu1 }
 0x104   : > { %v395_v25 = vpop.f32.mrb[3].mxu0  ;;  %v415_v26 = vpop.f32.mrb[3].mxu1  ;;  %v444_v29 = vmul.f32 %v971_v23, %v971_v23  ;;  %v448_v41 = vmul.f32 %v977_v24, %v977_v24 }
 0x105   : > { %v426_v27 = vadd.f32 %v425_v20, %v395_v25  ;;  %v443_v28 = vmul.f32 %v395_v25, %v395_v25  ;;  %v447_v38 = vmul.f32 %v415_v26, %v415_v26 }
 0x107   : > { %v427_v30 = vadd.f32 %v971_v23, %v426_v27  ;;  %v450_v31 = vadd.f32 %v449_v22, %v443_v28 }
 0x109   : > { %v451_v33 = vadd.f32 %v450_v31, %v444_v29  ;;  %v428_v34 = vadd.f32 %v427_v30, %v405_v19 }
 0x10b   : > { %v452_v36 = vadd.f32 %v451_v33, %v445_v32  ;;  %v429_v37 = vadd.f32 %v974_v16, %v428_v34 }
 0x10d   : > { %v430_v39 = vadd.f32 %v429_v37, %v415_v26  ;;  %v453_v40 = vadd.f32 %v452_v36, %v446_v35 }
 0x10f   : > { %v431_v42 = vadd.f32 %v977_v24, %v430_v39  ;;  %v454_v43 = vadd.f32 %v453_v40, %v447_v38 }
 0x111   : > { %v432_v44 = vrot.slane %v431_v42, 4  ;;  %v455_v45 = vadd.f32 %v454_v43, %v448_v41 }
 0x113   : > { %v433_v46 = vadd.f32 %v432_v44, %v431_v42  ;;  %v456_v47 = vrot.slane %v455_v45, 4 }
 0x115   : > { %v434_v48 = vrot.slane %v433_v46, 2  ;;  %v457_v49 = vadd.f32 %v456_v47, %v455_v45 }
 0x117   : > { %v435_v50 = vadd.f32 %v434_v48, %v433_v46  ;;  %v458_v51 = vrot.slane %v457_v49, 2 }
 0x119   : > { %v436_v52 = vrot.slane %v435_v50, 1  ;;  %v459_v53 = vadd.f32 %v458_v51, %v457_v49 }
 0x11b   : > { %v437_v55 = vadd.f32 %v436_v52, %v435_v50  ;;  %v460_v56 = vrot.slane %v459_v53, 1  ;;  %467 = sbr.rel (%p895_p9) target bundleno = 323 (0x143), region = 56 }
 0x11d   : > { %v438_v58 = vadd.f32 %v437_v55, %v424_v54  ;;  %v461_v59 = vadd.f32 %v460_v56, %v459_v53 }
 0x11f   : > { %439 = vst [vmem:[#allocation2] sm:$0x1] %v438_v58  ;;  %v462_v60 = vadd.f32 %v461_v59, %v440_v57 }
 0x121   : > { %463 = vst [vmem:[#allocation3] sm:$0x1] %v462_v60 }
 0x126   : > { %v468_v61 = vld [vmem:[#allocation2] sm:$0x1] }
 0x127   : > { %v469_v63 = vmul.f32 0.005, %v468_v61 }
 0x128   : > { %v470_v62 = vld [vmem:[#allocation3] sm:$0x1] }
 0x129   : > { %v471_v0 = vmul.f32 0.005, %v470_v62  ;;  %v472_v1 = vmul.f32 %v469_v63, %v469_v63 }
 0x12b   : > { %v473_v2 = vsub.f32 %v471_v0, %v472_v1 }
 0x12d   : > { %v474_v3 = vmax.f32 %v473_v2, 0.0 }
 0x12f   : > { %v476_v4 = vadd.f32 1e-05, %v474_v3 }
 0x131   : > { %1151 = vrsqrt.f32 %v476_v4 }
 0x13b   : > { %v1152_v6 = vpop.eup %1151 }
 0x13c   : > { %v478_v7 = vmul.f32 %v1152_v6, %v475_v5 }
 0x13e   : > { %479 = vst [vmem:[#allocation2] sm:$0x1] %v478_v7  ;;  %v481_v9 = vmul.f32 %v478_v7, %v469_v63 }
 0x140   : > { %v482_v10 = vsub.f32 %v480_v8, %v481_v9 }
 0x142   : > { %483 = vst [vmem:[#allocation3] sm:$0x1] %v482_v10 }
 0x143 PF: > { %p896_p10 = scmp.ne.s32.totalorder %s1179_s22, 1 }
 0x144   : > { %v496_v11 = vld [vmem:[%s1425_s1] sm:$0xff] (!%p896_p10)  ;;  %v497_v12 = vld [vmem:[%s1425_s1 + $0x8] sm:$0xff] (!%p896_p10)  ;;  %v498_v13 = vld [vmem:[%s1425_s1 + $0x10] sm:$0xff] (!%p896_p10)  ;;  %vm500_vm1 = vcmask (!%p896_p10), 261120   ;;  %vm796_vm2 = vcmask (!%p896_p10), 130048  }
 0x145   : > { %487 = sbr.rel (%p896_p10) target bundleno = 783 (0x30f), region = 60  ;;  %v1050_v14 = vpack.c.bf16 (!%p896_p10), %v497_v12, %v496_v11  ;;  %v499_v15 = vld [vmem:[%s1425_s1 + $0x18] sm:$0xff] (!%p896_p10)  ;;  %v488_v16 = vld [vmem:[%s1269_s10] sm:$0xff] (!%p896_p10)  ;;  %v669_v19 = vld [vmem:[%s1428_s4 + $0x8] sm:$0xff] (!%p896_p10) }
 0x146   : > { %v1054_v17 = vpack.c.bf16 (!%p896_p10), %v499_v15, %v498_v13  ;;  %986 = vmatprep.mubr.msk.f32.mxu0 (!%p896_p10), %vm500_vm1, %v488_v16  ;;  %v668_v18 = vld [vmem:[%s1428_s4] sm:$0xff] (!%p896_p10)  ;;  %v670_v20 = vld [vmem:[%s1428_s4 + $0x10] sm:$0xff] (!%p896_p10)  ;;  %v671_v22 = vld [vmem:[%s1428_s4 + $0x18] sm:$0xff] (!%p896_p10) }
 0x147   : > { %1051 = vmatprep.subr.bf16.mxu0 (!%p896_p10), %v1050_v14  ;;  %v1058_v21 = vpack.c.bf16 (!%p896_p10), %v669_v19, %v668_v18  ;;  %v1062_v23 = vpack.c.bf16 (!%p896_p10), %v671_v22, %v670_v20  ;;  %v489_v24 = vld [vmem:[%s1269_s10 + $0x8] sm:$0xff] (!%p896_p10)  ;;  %v490_v25 = vld [vmem:[%s1269_s10 + $0x10] sm:$0xff] (!%p896_p10)  ;;  %v672_v26 = vld [vmem:[%s1428_s4 + $0x20] sm:$0xff] (!%p896_p10) }
 0x148   : > { %1053 = vmatpush3.bf16.msra.mxu0 (!%p896_p10), %v1050_v14  ;;  %v673_v27 = vld [vmem:[%s1428_s4 + $0x28] sm:$0xff] (!%p896_p10)  ;;  %v491_v28 = vld [vmem:[%s1269_s10 + $0x18] sm:$0xff] (!%p896_p10)  ;;  %v492_v30 = vld [vmem:[%s1269_s10 + $0x20] sm:$0xff] (!%p896_p10) }
 0x149   : > { %1055 = vmatprep.subr.bf16.mxu0 (!%p896_p10), %v1054_v17  ;;  %1094 = vmatprep.subr.bf16.mxu1 (!%p896_p10), %v1058_v21  ;;  %v1066_v29 = vpack.c.bf16 (!%p896_p10), %v673_v27, %v672_v26  ;;  %v674_v31 = vld [vmem:[%s1428_s4 + $0x30] sm:$0xff] (!%p896_p10)  ;;  %v675_v32 = vld [vmem:[%s1428_s4 + $0x38] sm:$0xff] (!%p896_p10)  ;;  %v493_v33 = vld [vmem:[%s1269_s10 + $0x28] sm:$0xff] (!%p896_p10) }
 0x14a   : > { %1102 = vmatpush3.bf16.msra.mxu1 (!%p896_p10), %v1058_v21  ;;  %v1070_v34 = vpack.c.bf16 (!%p896_p10), %v675_v32, %v674_v31  ;;  %v494_v35 = vld [vmem:[%s1269_s10 + $0x30] sm:$0xff] (!%p896_p10)  ;;  %v676_v36 = vld [vmem:[%s1428_s4 + $0x40] sm:$0xff] (!%p896_p10)  ;;  %v677_v37 = vld [vmem:[%s1428_s4 + $0x48] sm:$0xff] (!%p896_p10) }
 0x14b   : > { %1095 = vmatprep.subr.bf16.mxu1 (!%p896_p10), %v1062_v23  ;;  %v495_v38 = vld [vmem:[%s1269_s10 + $0x38] sm:$0xff] (!%p896_p10)  ;;  %v1074_v39 = vpack.c.bf16 (!%p896_p10), %v677_v37, %v676_v36  ;;  %v678_v40 = vld [vmem:[%s1428_s4 + $0x50] sm:$0xff] (!%p896_p10)  ;;  %v680_v43 = vld [vmem:[%s1428_s4 + $0x60] sm:$0xff] (!%p896_p10) }
 0x14c   : > { %1057 = vmatpush3.bf16.msra.mxu0 %v1054_v17  ;;  %v679_v41 = vld [vmem:[%s1428_s4 + $0x58] sm:$0xff]  ;;  %v681_v44 = vld [vmem:[%s1428_s4 + $0x68] sm:$0xff]  ;;  %v682_v46 = vld [vmem:[%s1428_s4 + $0x70] sm:$0xff] }
 0x14d   : > { %1059 = vmatprep.subr.bf16.mxu0 %v1058_v21  ;;  %v1078_v42 = vpack.c.bf16 %v679_v41, %v678_v40  ;;  %v1082_v45 = vpack.c.bf16 %v681_v44, %v680_v43  ;;  %v683_v47 = vld [vmem:[%s1428_s4 + $0x78] sm:$0xff]  ;;  %v905_v49 = vld [vmem:[#allocation2] ss:$0 sm:$0xff]  ;;  %v906_v51 = vld [vmem:[#allocation3] ss:$0 sm:$0xff] }
 0x14e   : > { %1103 = vmatpush3.bf16.msra.mxu1 %v1062_v23  ;;  %v1086_v48 = vpack.c.bf16 %v683_v47, %v682_v46  ;;  %v907_v19 = vld [vmem:[%s1429_s5] ss:$0 sm:$0xff] }
 0x14f   : > { %987 = vmatmul.mubr.msk.f32.vlgmr.msra.gmra.mrb[0].mxu0 %vm500_vm1, %v489_v24  ;;  %1096 = vmatprep.subr.bf16.mxu1 %v1066_v29 }
 0x150   : > { %989 = vmatprep.mubr.msk.f32.mxu0 %vm500_vm1, %v490_v25  ;;  %1061 = vmatpush3.bf16.msra.mxu0 %v1058_v21 }
 0x151   : > { %1063 = vmatprep.subr.bf16.mxu0 %v1062_v23 }
 0x152   : > { %1104 = vmatpush3.bf16.msra.mxu1 %v1066_v29 }
 0x153   : > { %990 = vmatmul.mubr.msk.f32.gmra.mrb[2].mxu0 %vm500_vm1, %v491_v28  ;;  %1097 = vmatprep.subr.bf16.mxu1 %v1070_v34 }
 0x154   : > { %992 = vmatprep.mubr.msk.f32.mxu0 %vm500_vm1, %v492_v30  ;;  %1065 = vmatpush3.bf16.msra.mxu0 %v1062_v23 }
 0x155   : > { %1067 = vmatprep.subr.bf16.mxu0 %v1066_v29 }
 0x156   : > { %1105 = vmatpush3.bf16.msra.mxu1 %v1070_v34 }
 0x157   : > { %993 = vmatmul.mubr.msk.f32.gmra.mrb[4].mxu0 %vm500_vm1, %v493_v33  ;;  %1098 = vmatprep.subr.bf16.mxu1 %v1074_v39 }
 0x158   : > { %995 = vmatprep.mubr.msk.f32.mxu0 %vm500_vm1, %v494_v35  ;;  %1069 = vmatpush3.bf16.msra.mxu0 %v1066_v29 }
 0x159   : > { %1071 = vmatprep.subr.bf16.mxu0 %v1070_v34 }
 0x15a   : > { %1106 = vmatpush3.bf16.msra.mxu1 %v1074_v39 }
 0x15b   : > { %996 = vmatmul.mubr.msk.f32.gmra.mrb[6].mxu0 %vm500_vm1, %v495_v38  ;;  %1099 = vmatprep.subr.bf16.mxu1 %v1078_v42 }
 0x15c   : > { %1073 = vmatpush3.bf16.msra.mxu0 %v1070_v34 }
 0x15d   : > { %1075 = vmatprep.subr.bf16.mxu0 %v1074_v39 }
 0x15e   : > { %1107 = vmatpush3.bf16.msra.mxu1 %v1078_v42 }
 0x15f   : > { %1100 = vmatprep.subr.bf16.mxu1 %v1082_v45 }
 0x160   : > { %1077 = vmatpush3.bf16.msra.mxu0 %v1074_v39 }
 0x161   : > { %1079 = vmatprep.subr.bf16.mxu0 %v1078_v42 }
 0x162   : > { %1108 = vmatpush3.bf16.msra.mxu1 %v1082_v45 }
 0x163   : > { %1101 = vmatprep.subr.bf16.mxu1 %v1086_v48 }
 0x164   : > { %1081 = vmatpush3.bf16.msra.mxu0 %v1078_v42 }
 0x165   : > { %1083 = vmatprep.subr.bf16.mxu0 %v1082_v45 }
 0x166   : > { %1109 = vmatpush3.bf16.msra.mxu1 %v1086_v48 }
 0x168   : > { %1085 = vmatpush3.bf16.msra.mxu0 %v1082_v45 }
 0x169   : > { %1087 = vmatprep.subr.bf16.mxu0 %v1086_v48 }
 0x16c   : > { %1089 = vmatpush3.bf16.msra.mxu0 %v1086_v48 }
 0x222   : > { %v988_v50 = vpop.f32.mrb[0].mxu0 }
 0x223   : > { %v638_v52 = vmul.f32 %v988_v50, %v905_v49  ;;  %v591_v53 = vpop.f32.mrb[1].mxu0 }
 0x224   : > { %v637_v54 = vmul.f32 %v905_v49, %v591_v53 }
 0x225   : > { %v653_v55 = vadd.f32 %v906_v51, %v638_v52 }
 0x226   : > { %v652_v56 = vadd.f32 %v906_v51, %v637_v54  ;;  %v991_v57 = vpop.f32.mrb[2].mxu0 }
 0x227   : > { %v640_v58 = vmul.f32 %v991_v57, %v905_v49  ;;  %v601_v59 = vpop.f32.mrb[3].mxu0  ;;  %v661_v62 = vmax.f32 %v653_v55, 0.0 }
 0x228   : > { %v660_v60 = vmax.f32 %v652_v56, 0.0  ;;  %v639_v61 = vmul.f32 %v905_v49, %v601_v59 }
 0x229   : > { %v655_v63 = vadd.f32 %v906_v51, %v640_v58 }
 0x22a   : > { %v994_v0 = vpop.f32.mrb[4].mxu0  ;;  %1030 = vmatprep.mubr.f32.mxu0 %v660_v60  ;;  %v654_v1 = vadd.f32 %v906_v51, %v639_v61 }
 0x22b   : > { %v642_v2 = vmul.f32 %v994_v0, %v905_v49  ;;  %v611_v3 = vpop.f32.mrb[5].mxu0  ;;  %1031 = vmatmul.mubr.f32.vlgmr.msra.gmra.mrb[8].mxu0 %v661_v62  ;;  %v663_v6 = vmax.f32 %v655_v63, 0.0 }
 0x22c   : > { %v641_v4 = vmul.f32 %v905_v49, %v611_v3  ;;  %v662_v5 = vmax.f32 %v654_v1, 0.0 }
 0x22d   : > { %v657_v7 = vadd.f32 %v906_v51, %v642_v2 }
 0x22e   : > { %v656_v8 = vadd.f32 %v906_v51, %v641_v4  ;;  %v997_v9 = vpop.f32.mrb[6].mxu0  ;;  %1033 = vmatprep.mubr.f32.mxu1 %v662_v5 }
 0x22f   : > { %v644_v10 = vmul.f32 %v997_v9, %v905_v49  ;;  %v621_v11 = vpop.f32.mrb[7].mxu0  ;;  %1034 = vmatmul.mubr.f32.vlgmr.msra.gmra.mrb[0].mxu1 %v663_v6  ;;  %v665_v14 = vmax.f32 %v657_v7, 0.0 }
 0x230   : > { %v664_v12 = vmax.f32 %v656_v8, 0.0  ;;  %v643_v13 = vmul.f32 %v905_v49, %v621_v11 }
 0x231   : > { %v659_v15 = vadd.f32 %v906_v51, %v644_v10 }
 0x232   : > { %v658_v16 = vadd.f32 %v906_v51, %v643_v13  ;;  %1036 = vmatprep.mubr.f32.mxu1 %v664_v12 }
 0x233   : > { %1037 = vmatmul.mubr.f32.gmra.mrb[2].mxu1 %v665_v14  ;;  %v667_v18 = vmax.f32 %v659_v15, 0.0 }
 0x234   : > { %v666_v17 = vmax.f32 %v658_v16, 0.0 }
 0x236   : > { %1039 = vmatprep.mubr.f32.mxu1 %v666_v17 }
 0x237   : > { %1040 = vmatmul.mubr.f32.gmra.mrb[4].mxu1 %v667_v18 }
 0x2fe   : > { %v1032_v20 = vpop.f32.mrb[8].mxu0 }
 0x2ff   : > { %v763_v21 = vadd.f32 %v1032_v20, %v907_v19  ;;  %v757_v22 = vpop.f32.mrb[9].mxu0 }
 0x300   : > { %v758_v23 = vadd.f32 %v907_v19, %v757_v22 }
 0x301   : > { %798 = vst.msk [vmem:[%s1274_s14 + $0x8] sm:$0xff] %vm796_vm2, %v763_v21 }
 0x302   : > { %797 = vst.msk [vmem:[%s1274_s14] sm:$0xff] %vm796_vm2, %v758_v23  ;;  %v1035_v24 = vpop.f32.mrb[0].mxu1 }
 0x303   : > { %v773_v25 = vadd.f32 %v1035_v24, %v907_v19  ;;  %v767_v26 = vpop.f32.mrb[1].mxu1 }
 0x304   : > { %v768_v27 = vadd.f32 %v907_v19, %v767_v26 }
 0x305   : > { %800 = vst.msk [vmem:[%s1274_s14 + $0x18] sm:$0xff] %vm796_vm2, %v773_v25 }
 0x306   : > { %799 = vst.msk [vmem:[%s1274_s14 + $0x10] sm:$0xff] %vm796_vm2, %v768_v27  ;;  %v1038_v28 = vpop.f32.mrb[2].mxu1 }
 0x307   : > { %v783_v29 = vadd.f32 %v1038_v28, %v907_v19  ;;  %v777_v30 = vpop.f32.mrb[3].mxu1 }
 0x308   : > { %v778_v31 = vadd.f32 %v907_v19, %v777_v30 }
 0x309   : > { %802 = vst.msk [vmem:[%s1274_s14 + $0x28] sm:$0xff] %vm796_vm2, %v783_v29 }
 0x30a   : > { %801 = vst.msk [vmem:[%s1274_s14 + $0x20] sm:$0xff] %vm796_vm2, %v778_v31  ;;  %v1041_v32 = vpop.f32.mrb[4].mxu1 }
 0x30b   : > { %v793_v33 = vadd.f32 %v1041_v32, %v907_v19  ;;  %v787_v34 = vpop.f32.mrb[5].mxu1 }
 0x30c   : > { %v788_v35 = vadd.f32 %v907_v19, %v787_v34 }
 0x30d   : > { %804 = vst.msk [vmem:[%s1274_s14 + $0x38] sm:$0xff] %vm796_vm2, %v793_v33 }
 0x30e   : > { %803 = vst.msk [vmem:[%s1274_s14 + $0x30] sm:$0xff] %vm796_vm2, %v788_v35 }
 0x30f PF: > { %s16_s25 = sadd.s32 1, %s1191_s25   ;;  %s1431_s21 = smov %s1183_s23 }
 0x310   : > { %p13_p11 = scmp.ge.s32.totalorder %s16_s25, 10   ;;  %s1432_s22 = smov %s1187_s24 }
 0x311   : > { %s1433_s23 = smov %s1436_s26  ;;  %s1434_s24 = smov %s1440_s27 }
 0x312   :  { %15 = sbr.rel (!%p13_p11) target bundleno = 3 (0x3), region = 90 }

</bundles_post_ra>
